<compile_context>
chip_gen: v7x
topology: tpu7x:2x2x1
jax: 0.10.0
libtpu: 0.0.40
codegen_flags: <defaults>
</compile_context>

<pallas_src>
import math

import jax
import jax.numpy as jnp
from jax.experimental import pallas as pl
from jax.experimental.pallas import tpu as pltpu

UNIFORM_RANGE = 0.3
_LANE = 128
_TARGET_X_BLOCK_BYTES = 6 * 1024 * 1024  # ~6 MiB per (N, TS, 128) x block


def _round_up(a, b):
    return ((a + b - 1) // b) * b


def _sublane_multiple(dtype):
    # Full packed vregs: 8 sublanes for 4-byte, 16 for 2-byte, 32 for 1-byte.
    itemsize = jnp.dtype(dtype).itemsize
    return max(8, 32 // itemsize)


def _choose_ts(s, n, itemsize, sub):
    """Feature-block height TS (in 128-lane rows): a multiple of `sub`, the
    (N, TS, 128) x block within the byte budget, and >= 2 feature blocks
    whenever possible (so v7x's two TensorCores both get work)."""
    budget_rows = _TARGET_X_BLOCK_BYTES // (n * _LANE * itemsize)
    budget_rows = max(sub, (budget_rows // sub) * sub)
    ts = min(budget_rows, _round_up(s, sub))
    ts = max(sub, (ts // sub) * sub)
    if pl.cdiv(s, ts) < 2 and s > sub:
        ts = max(sub, _round_up(pl.cdiv(s, 2), sub))
    return ts


def _feature_noise_kernel(x_ref, noise_ref, o_ref):
    # x_ref, o_ref: (N, TS, 128) tiles; noise_ref: (TS, 128) f32, broadcast
    # over the leading batch dim. Compute x*noise + x in f32, cast on store.
    xf = x_ref[...].astype(jnp.float32)
    o_ref[...] = (xf * noise_ref[...] + xf).astype(o_ref.dtype)


def sample_feature_noise(key, feature_shape, uniform_range=UNIFORM_RANGE):
    """noise ~ U(-r, r) with shape x.shape[1:] (torch Uniform.sample equivalent)."""
    return jax.random.uniform(
        key, feature_shape, dtype=jnp.float32,
        minval=-uniform_range, maxval=uniform_range)


def feature_noise(x, key, uniform_range=UNIFORM_RANGE):
    """x: (N, *feature_dims). Returns x * noise + x with noise ~ U(-r, r)
    shared across the batch dimension (shape = x.shape[1:])."""
    n = x.shape[0]
    feat_shape = x.shape[1:]
    f = math.prod(feat_shape)
    itemsize = jnp.dtype(x.dtype).itemsize
    sub = _sublane_multiple(x.dtype)

    s = pl.cdiv(f, _LANE)
    ts = _choose_ts(s, n, itemsize, sub)
    s_pad = _round_up(max(s, ts), ts)
    f_pad = s_pad * _LANE

    noise = sample_feature_noise(key, feat_shape, uniform_range)

    x_flat = x.reshape(n, f)
    noise_flat = noise.reshape(f)
    if f_pad != f:
        x_flat = jnp.pad(x_flat, ((0, 0), (0, f_pad - f)))
        noise_flat = jnp.pad(noise_flat, (0, f_pad - f))

    x3 = x_flat.reshape(n, s_pad, _LANE)          # (N, S_pad, 128)
    noise2 = noise_flat.reshape(s_pad, _LANE)     # (S_pad, 128), f32

    grid = (s_pad // ts,)

    out3 = pl.pallas_call(
        _feature_noise_kernel,
        out_shape=jax.ShapeDtypeStruct((n, s_pad, _LANE), x.dtype),
        grid=grid,
        in_specs=[
            pl.BlockSpec((n, ts, _LANE), lambda fi: (0, fi, 0)),  # x slab
            pl.BlockSpec((ts, _LANE), lambda fi: (fi, 0)),         # noise block
        ],
        out_specs=pl.BlockSpec((n, ts, _LANE), lambda fi: (0, fi, 0)),
        compiler_params=pltpu.CompilerParams(
            dimension_semantics=("parallel",),
            vmem_limit_bytes=64 * 1024 * 1024,
        ),
    )(x3, noise2)

    out = out3.reshape(n, f_pad)
    if f_pad != f:
        out = out[:, :f]
    return out.reshape(x.shape)


if __name__ == "__main__":
    key = jax.random.PRNGKey(0)
    kx, kn = jax.random.split(key)

    # Primary test: shapes implied by the module (batch=2, channels=4, 16x16).
    x = jax.random.normal(kx, (2, 4, 16, 16), dtype=jnp.float32)
    out = jax.block_until_ready(feature_noise(x, kn))

    noise = sample_feature_noise(kn, x.shape[1:])
    ref = x * noise[None] + x
    assert out.shape == x.shape
    assert bool(jnp.all(jnp.abs(noise) <= UNIFORM_RANGE))            # U(-r, r)
    assert bool(jnp.allclose(out, ref, atol=1e-6, rtol=1e-6))        # x*noise + x

    # Secondary test: feature dim NOT a multiple of 128 (padding path).
    x2 = jax.random.normal(kx, (2, 3, 28, 28), dtype=jnp.float32)
    out2 = jax.block_until_ready(feature_noise(x2, kn))
    noise2 = sample_feature_noise(kn, x2.shape[1:])
    ref2 = x2 * noise2[None] + x2
    assert out2.shape == x2.shape
    assert bool(jnp.allclose(out2, ref2, atol=1e-6, rtol=1e-6))

    print("KERNEL_OK")
</pallas_src>

<mosaic_0001>
module attributes {stable_mosaic.version = 11 : i64} {
  func.func @_feature_noise_kernel(%arg0: i32, %arg1: memref<2x8x128xf32, #tpu.memory_space<vmem>>, %arg2: memref<8x128xf32, #tpu.memory_space<vmem>>, %arg3: memref<2x8x128xf32, #tpu.memory_space<vmem>>) attributes {dimension_semantics = [#tpu.dimension_semantics<parallel>], iteration_bounds = array<i64: 1>, scalar_prefetch = 0 : i64, scratch_operands = 0 : i64, tpu.core_type = #tpu.core_type<tc>, window_params = [{transform_indices = @transform_0, window_bounds = array<i64: 2, 8, 128>}, {transform_indices = @transform_1, window_bounds = array<i64: 8, 128>}, {transform_indices = @transform_2, window_bounds = array<i64: 2, 8, 128>}]} {
    %c0 = arith.constant 0 : index
    %c0_0 = arith.constant 0 : index
    %c0_1 = arith.constant 0 : index
    %0 = vector.load %arg1[%c0, %c0_0, %c0_1] : memref<2x8x128xf32, #tpu.memory_space<vmem>>, vector<2x8x128xf32>
    %c0_2 = arith.constant 0 : index
    %c0_3 = arith.constant 0 : index
    %1 = vector.load %arg2[%c0_2, %c0_3] : memref<8x128xf32, #tpu.memory_space<vmem>>, vector<8x128xf32>
    %2 = vector.shape_cast %1 : vector<8x128xf32> to vector<1x8x128xf32>
    %3 = vector.broadcast %2 : vector<1x8x128xf32> to vector<2x8x128xf32>
    %4 = arith.mulf %0, %3 : vector<2x8x128xf32>
    %5 = arith.addf %4, %0 : vector<2x8x128xf32>
    %c0_4 = arith.constant 0 : index
    %c0_5 = arith.constant 0 : index
    %c0_6 = arith.constant 0 : index
    %6 = vector.load %arg3[%c0_4, %c0_5, %c0_6] : memref<2x8x128xf32, #tpu.memory_space<vmem>>, vector<2x8x128xf32>
    tpu.vector_store %arg3[%c0_4, %c0_5, %c0_6], %5 {strides = array<i32>} : memref<2x8x128xf32, #tpu.memory_space<vmem>>, vector<2x8x128xf32>,
    return
  }
  func.func @transform_0(%arg0: i32) -> (i32, i32, i32) {
    %c0_i32 = arith.constant 0 : i32
    %c0_i32_0 = arith.constant 0 : i32
    %c0_i32_1 = arith.constant 0 : i32
    return %c0_i32, %arg0, %c0_i32_0 : i32, i32, i32
  }
  func.func @transform_1(%arg0: i32) -> (i32, i32) {
    %c0_i32 = arith.constant 0 : i32
    %c0_i32_0 = arith.constant 0 : i32
    return %arg0, %c0_i32 : i32, i32
  }
  func.func @transform_2(%arg0: i32) -> (i32, i32, i32) {
    %c0_i32 = arith.constant 0 : i32
    %c0_i32_0 = arith.constant 0 : i32
    %c0_i32_1 = arith.constant 0 : i32
    return %c0_i32, %arg0, %c0_i32_0 : i32, i32, i32
  }
}

</mosaic_0001>

<bundles_post_ra>
// kernel: tpu_custom_call.1
= control target key start
LH: loop header
LB: loop body
LE: loop exit
PB: predicated region body
PF: predicated region fallthrough
CT: control target
= control target key end

     0   :  { %7 = vsyncpa [#allocation3], 0  ;;  %s204_s0 = inlined_call_operand.hbm [shape: f32[2,8,128], index: 0, kind: input, shape index: {}]   ;;  %s205_s1 = inlined_call_operand.hbm [shape: f32[8,128], index: 1, kind: input, shape index: {}]   ;;  %s206_s2 = inlined_call_operand.hbm [shape: f32[2,8,128], index: 2, kind: output, shape index: {}]  }
   0x1   :  { %8 = vsyncpa [#allocation6], 0 }
   0x2   :  { %9 = vsyncpa [#allocation4], 0  ;;  %s142_s9 = smov [#allocation2]   ;;  %s70_s13 = scalar_lea.hbm %s204_s0, 256 }
   0x3   :  { %s15_s10 = sshll.u32 %s142_s9, 4  ;;  %p71_p0 = scmp.ne.s32.totalorder %s204_s0, %s70_s13  ;;  %s16_s10 = int_to_ptr.vmem [resolvable:$true] %s15_s10 }
   0x4   :  { %p74_p1 = scmp.lt.u32.totalorder %s70_s13, %s204_s0 }
   0x6   :  { %p76_p2 = pnand %p74_p1, %p71_p0 }
   0x8   :  { %79 = shalt.err (!%p76_p2)
}
   0x9   :  { %s80_s18 = scalar_lea.vmem %s16_s10, 256  ;;  %p85_p4 = scmp.lt.s32.totalorder %s16_s10, %s16_s10 }
   0xa   :  { %p81_p3 = scmp.ne.s32.totalorder %s16_s10, %s80_s18  ;;  %p86_p5 = scmp.lt.s32.totalorder %s80_s18, %s80_s18 }
   0xc   :  { %p87_p6 = por %p86_p5, %p85_p4 }
   0xe   :  { %p88_p7 = pnand %p87_p6, %p81_p3 }
  0x10   :  { %91 = shalt.err (!%p88_p7)
}
  0x11   :  { %s143_s19 = smov 128   ;;  %s144_s20 = smov 8  }
  0x12   :  { %21 = dma.hbm_to_vmem [thread:$0]  %s204_s0, 256, %s16_s10, [#allocation3], %s143_s19, %s143_s19, %s144_s20  }
  0x13   :  { %s145_s23 = smov [#allocation5]   ;;  %s92_s27 = scalar_lea.hbm %s205_s1, 128 }
  0x14   :  { %s28_s24 = sshll.u32 %s145_s23, 4  ;;  %p93_p8 = scmp.ne.s32.totalorder %s205_s1, %s92_s27  ;;  %s29_s24 = int_to_ptr.vmem [resolvable:$true] %s28_s24 }
  0x15   :  { %p96_p9 = scmp.lt.u32.totalorder %s92_s27, %s205_s1 }
  0x17   :  { %p98_p10 = pnand %p96_p9, %p93_p8 }
  0x19   :  { %101 = shalt.err (!%p98_p10)
}
  0x1a   :  { %s102_s4 = scalar_lea.vmem %s29_s24, 128  ;;  %p107_p12 = scmp.lt.s32.totalorder %s29_s24, %s29_s24 }
  0x1b   :  { %p103_p11 = scmp.ne.s32.totalorder %s29_s24, %s102_s4  ;;  %p108_p13 = scmp.lt.s32.totalorder %s102_s4, %s102_s4 }
  0x1d   :  { %p109_p0 = por %p108_p13, %p107_p12 }
  0x1f   :  { %p110_p1 = pnand %p109_p0, %p103_p11 }
  0x21   :  { %113 = shalt.err (!%p110_p1)
}
  0x22   :  { %31 = dma.hbm_to_vmem [thread:$0]  %s205_s1, 128, %s29_s24, [#allocation6]  }
  0x23   :  { %136 = dma.done.wait [#allocation3], 256  }
  0x24   :  { %137 = vsyncadd [#allocation3], 4294967040 }
  0x25   :  { %138 = dma.done.wait [#allocation6], 128  }
  0x26   :  { %139 = vsyncadd [#allocation6], 4294967168  ;;  %v38_v0 = vld [vmem:[#allocation2] sm:$0xff]  ;;  %v40_v1 = vld [vmem:[#allocation5] sm:$0xff]  ;;  %s146_s6 = smov [#allocation7]  }
  0x27   :  { %v39_v2 = vld [vmem:[#allocation2 + $0x8] sm:$0xff]  ;;  %s52_s7 = sshll.u32 %s146_s6, 4  ;;  %v41_v3 = vmul.f32 %v40_v1, %v38_v0  ;;  %s53_s7 = int_to_ptr.vmem [resolvable:$true] %s52_s7 }
  0x28   :  { %v42_v4 = vmul.f32 %v40_v1, %v39_v2  ;;  %s114_s8 = scalar_lea.vmem %s53_s7, 256  ;;  %p119_p3 = scmp.lt.s32.totalorder %s53_s7, %s53_s7 }
  0x29   :  { %v43_v5 = vadd.f32 %v41_v3, %v38_v0  ;;  %p115_p2 = scmp.ne.s32.totalorder %s53_s7, %s114_s8  ;;  %p120_p4 = scmp.lt.s32.totalorder %s114_s8, %s114_s8 }
  0x2a   :  { %v44_v6 = vadd.f32 %v42_v4, %v39_v2 }
  0x2b   :  { %45 = vst [vmem:[#allocation7] sm:$0xff] %v43_v5  ;;  %p121_p5 = por %p120_p4, %p119_p3 }
  0x2c   :  { %46 = vst [vmem:[#allocation7 + $0x8] sm:$0xff] %v44_v6 }
  0x2d   :  { %p122_p6 = pnand %p121_p5, %p115_p2 }
  0x2f   :  { %125 = shalt.err (!%p122_p6)
}
  0x30   :  { %s126_s10 = scalar_lea.hbm %s206_s2, 256 }
  0x31   :  { %p127_p7 = scmp.ne.s32.totalorder %s206_s2, %s126_s10  ;;  %p130_p8 = scmp.lt.u32.totalorder %s126_s10, %s206_s2 }
  0x33   :  { %p132_p9 = pnand %p130_p8, %p127_p7 }
  0x35   :  { %135 = shalt.err (!%p132_p9)
}
  0x36   :  { %58 = dma.vmem_to_hbm [thread:$0]  %s53_s7, 256, %s206_s2, [#allocation4], %s143_s19, %s143_s19, %s144_s20  }
  0x37   :  { %140 = dma.done.wait [#allocation4], 256  }
  0x38   :  { %141 = vsyncadd [#allocation4], 4294967040 }
  0x39   :  { %62 = vsyncpa [#allocation3], 1 }
  0x3a   :  { %63 = vsyncpa [#allocation6], 1 }
  0x3b   :  { %64 = vsyncpa [#allocation4], 1 }

</bundles_post_ra>
